<compile_context>
chip_gen: v7x
topology: tpu7x:2x2x1
jax: 0.10.0
libtpu: 0.0.40
codegen_flags: <defaults>
</compile_context>

<pallas_src>
import functools

import numpy as np

import jax
import jax.numpy as jnp
from jax.experimental import pallas as pl
from jax.experimental.pallas import tpu as pltpu


_VMEM_BUDGET_PER_BUFFER = 2 * 1024 * 1024  # bytes of input dtype per buffer (x2 for double-buffering)


def _round_up(a, b):
    return ((a + b - 1) // b) * b


def _static_int_pow(x, n):
    """x**n for a static Python int n >= 1 via multiply chain (VPU only)."""
    result = None
    base = x
    while n > 0:
        if n & 1:
            result = base if result is None else result * base
        n >>= 1
        if n:
            base = base * base
    return result


def _static_root(m, p_int):
    """m**(1/p_int) for a static integer p_int; m > 0."""
    if p_int == 1:
        return m
    if p_int == 2:
        return jnp.sqrt(m)
    if p_int == 4:
        return jnp.sqrt(jnp.sqrt(m))
    return jnp.exp(jnp.log(m) * (1.0 / p_int))


def _gem_body(x_ref, o_ref, acc_ref, *, eps, inv_hw, hw, tile_hw, hw_ragged,
              pow_fn, root_fn):
    """Shared body: clamp -> pow -> (masked) lane reduce -> accumulate -> root.

    Grid is (row_tiles, hw_tiles); the spatial axis (1) is the inner
    "arbitrary" reduction axis.  acc_ref is a lane-dense (1, tile_rows) f32
    accumulator; o_ref is the lane-dense (1, tile_rows) output block.
    """
    j = pl.program_id(1)

    @pl.when(j == 0)
    def _init():
        acc_ref[...] = jnp.zeros_like(acc_ref)

    x = x_ref[...].astype(jnp.float32)
    xp = pow_fn(jnp.maximum(x, eps))            # clamp(min=eps) then x**p
    if hw_ragged:
        # Last spatial block may read past H*W; zero those lanes before summing.
        col = j * tile_hw + jax.lax.broadcasted_iota(jnp.int32, xp.shape, 1)
        xp = jnp.where(col < hw, xp, 0.0)
    # Lane reduce -> (tile_rows,) -> lane-dense (1, tile_rows) accumulate.
    acc_ref[...] += jnp.sum(xp, axis=1)[None, :]

    @pl.when(j == pl.num_programs(1) - 1)
    def _finalize():
        m = acc_ref[...] * inv_hw               # mean over H*W; m >= eps**p > 0
        o_ref[...] = root_fn(m).astype(o_ref.dtype)


def _gem_kernel_int_p(x_ref, o_ref, acc_ref, *, eps, inv_hw, hw, tile_hw,
                      hw_ragged, p_int):
    _gem_body(x_ref, o_ref, acc_ref, eps=eps, inv_hw=inv_hw, hw=hw,
              tile_hw=tile_hw, hw_ragged=hw_ragged,
              pow_fn=lambda v: _static_int_pow(v, p_int),
              root_fn=lambda m: _static_root(m, p_int))


def _gem_kernel_dyn_p(p_ref, x_ref, o_ref, acc_ref, *, eps, inv_hw, hw, tile_hw,
                      hw_ragged):
    p = p_ref[0]                                 # learnable exponent from SMEM
    _gem_body(x_ref, o_ref, acc_ref, eps=eps, inv_hw=inv_hw, hw=hw,
              tile_hw=tile_hw, hw_ragged=hw_ragged,
              pow_fn=lambda v: jnp.exp(p * jnp.log(v)),       # v >= eps > 0
              root_fn=lambda m: jnp.exp(jnp.log(m) * (1.0 / p)))


def _pick_tiles(rows, hw, itemsize, sublane, budget):
    """Choose (tile_rows, tile_hw) so one input buffer stays within `budget`."""
    padded_hw = _round_up(hw, 128)               # lane padding counts in VMEM
    row_bytes = padded_hw * itemsize
    if sublane * row_bytes <= budget:
        # Whole spatial extent fits per block: single spatial grid step.
        tile_hw = hw
        cap = max(sublane, (budget // row_bytes) // sublane * sublane)
        # v7x megacore: prefer >= 4 row tiles when tiles still >= 512 KiB.
        quarter = _round_up(pl.cdiv(rows, 4), sublane)
        if quarter * row_bytes >= (512 << 10):
            cap = min(cap, quarter)
        tile_rows = rows if rows <= cap else cap   # full-dim block is always legal
    else:
        # Huge H*W: split the spatial axis; 2nd grid axis accumulates in VMEM.
        tile_rows = rows if rows < sublane else sublane
        tile_hw = max(128, (budget // (sublane * itemsize)) // 128 * 128)
    return tile_rows, tile_hw


def _concrete_scalar(p):
    """float(p) if p is concrete; None if p is traced/abstract (under jit)."""
    try:
        arr = np.asarray(jax.device_get(p), dtype=np.float64)
    except (TypeError, ValueError,
            jax.errors.TracerArrayConversionError,
            jax.errors.ConcretizationTypeError):
        return None
    return float(arr.reshape(-1)[0])


def gem_forward(x, p, eps=1e-6, *, p_static=None, block_bytes=None):
    """GeM forward.  x: (B, C, H, W); p: scalar / (1,) exponent.  -> (B, C, 1, 1).

    p_static: optional static Python value of p.  Pass it when calling under
      jax.jit so the integer-exponent fast path (VPU multiply chain, no
      per-element transcendentals) stays reachable; it must equal the runtime
      value of p.
    block_bytes: optional override of the per-buffer VMEM budget (testing).
    """
    B, C, H, W = x.shape
    rows, hw = B * C, H * W
    # (B, C) merge is layout-free; (H, W) merge may relayout when W % 128 != 0
    # (see module comment for the 3-D BlockSpec alternative).
    xf = x.reshape(rows, hw)

    itemsize = jnp.dtype(x.dtype).itemsize
    sublane = 8 * max(1, 4 // itemsize)           # 8 f32 / 16 bf16 / 32 int8
    budget = block_bytes if block_bytes is not None else _VMEM_BUDGET_PER_BUFFER
    tile_rows, tile_hw = _pick_tiles(rows, hw, itemsize, sublane, budget)
    num_row_tiles = pl.cdiv(rows, tile_rows)
    num_hw_tiles = pl.cdiv(hw, tile_hw)
    hw_ragged = (hw % tile_hw) != 0
    inv_hw = 1.0 / float(hw)

    grid = (num_row_tiles, num_hw_tiles)
    x_spec = pl.BlockSpec((tile_rows, tile_hw), lambda i, j: (i, j))
    # Lane-dense output: one (1, tile_rows) row per row tile (unmasked stores).
    o_spec = pl.BlockSpec((1, tile_rows), lambda i, j: (i, 0))
    out_shape = jax.ShapeDtypeStruct((num_row_tiles, tile_rows), x.dtype)
    scratch = [pltpu.VMEM((1, tile_rows), jnp.float32)]

    # VMEM footprint: 2x double-buffered input + a few f32 tile-sized temps.
    pad_hw = _round_up(tile_hw, 128)
    in_buf = _round_up(tile_rows, sublane) * pad_hw * itemsize
    f32_buf = _round_up(tile_rows, 8) * pad_hw * 4
    vmem_limit = int(min(max(2 * in_buf + 6 * f32_buf + (2 << 20), 16 << 20), 40 << 20))
    compiler_params = pltpu.CompilerParams(
        dimension_semantics=("parallel", "arbitrary"),
        vmem_limit_bytes=vmem_limit)

    pv = float(p_static) if p_static is not None else _concrete_scalar(p)
    use_int_fast_path = (pv is not None and float(pv).is_integer()
                         and 1.0 <= pv <= 16.0)

    io_bytes = rows * hw * itemsize + num_row_tiles * tile_rows * itemsize

    if use_int_fast_path:
        p_int = int(pv)
        n_mul = p_int.bit_length() - 1 + bin(p_int).count("1") - 1
        cost = pl.CostEstimate(
            flops=rows * hw * (n_mul + 2),        # clamp + multiply chain + reduce
            transcendentals=2 * rows,             # final log/exp per row only
            bytes_accessed=io_bytes)
        kernel = functools.partial(
            _gem_kernel_int_p, eps=float(eps), inv_hw=inv_hw, hw=hw,
            tile_hw=tile_hw, hw_ragged=hw_ragged, p_int=p_int)
        out = pl.pallas_call(
            kernel, out_shape=out_shape, grid=grid,
            in_specs=[x_spec], out_specs=o_spec, scratch_shapes=scratch,
            compiler_params=compiler_params, cost_estimate=cost,
        )(xf)
    else:
        cost = pl.CostEstimate(
            flops=rows * hw * 3,
            transcendentals=2 * rows * hw + 2 * rows,   # exp+log per element
            bytes_accessed=io_bytes)
        kernel = functools.partial(
            _gem_kernel_dyn_p, eps=float(eps), inv_hw=inv_hw, hw=hw,
            tile_hw=tile_hw, hw_ragged=hw_ragged)
        p_arr = jnp.asarray(p, dtype=jnp.float32).reshape((1,))
        out = pl.pallas_call(
            kernel, out_shape=out_shape, grid=grid,
            in_specs=[pl.BlockSpec(memory_space=pltpu.MemorySpace.SMEM), x_spec],
            out_specs=o_spec, scratch_shapes=scratch,
            compiler_params=compiler_params, cost_estimate=cost,
        )(p_arr, xf)

    # Lanes >= rows in the last (ragged) row tile hold unspecified data and are
    # discarded here; never consume them upstream of this slice.
    return out.reshape(-1)[:rows].reshape(B, C, 1, 1)


def gem_reference(x, p, eps=1e-6):
    """Pure-JAX reference matching the PyTorch GeM module."""
    pv = jnp.asarray(p, dtype=jnp.float32).reshape(-1)[0]
    xc = jnp.maximum(x.astype(jnp.float32), eps)
    pooled = jnp.mean(jnp.power(xc, pv), axis=(-2, -1), keepdims=True)
    return jnp.power(pooled, 1.0 / pv).astype(x.dtype)


if __name__ == "__main__":
    key = jax.random.PRNGKey(0)
    B, C, H, W = 2, 4, 16, 16
    x = jax.random.uniform(key, (B, C, H, W), dtype=jnp.float32)
    eps = 1e-6

    # Matches nn.Parameter(torch.ones(1) * 3).
    p = jnp.ones((1,), dtype=jnp.float32) * 3.0

    # 1) Eager, concrete p -> integer fast path.
    out = jax.block_until_ready(gem_forward(x, p, eps))
    ref = gem_reference(x, p, eps)
    assert out.shape == (B, C, 1, 1)
    assert jnp.allclose(out, ref, rtol=1e-4, atol=1e-5), (out, ref)

    # 2) Under jax.jit with static p -> integer fast path stays reachable.
    gem_jit = jax.jit(functools.partial(gem_forward, eps=eps, p_static=3))
    out_jit = jax.block_until_ready(gem_jit(x, p))
    assert jnp.allclose(out_jit, ref, rtol=1e-4, atol=1e-5), (out_jit, ref)

    # 3) Dynamic (traced, non-integer) exponent kernel.
    p_dyn = jnp.ones((1,), dtype=jnp.float32) * 2.5
    out_dyn = jax.block_until_ready(
        jax.jit(functools.partial(gem_forward, eps=eps))(x, p_dyn))
    ref_dyn = gem_reference(x, p_dyn, eps)
    assert jnp.allclose(out_dyn, ref_dyn, rtol=1e-4, atol=1e-5), (out_dyn, ref_dyn)

    # 4) bf16 input stays bf16 into the kernel (halves HBM reads); f32 accumulation.
    xb = x.astype(jnp.bfloat16)
    out_bf = jax.block_until_ready(gem_forward(xb, p, eps))
    ref_bf = gem_reference(xb, p, eps)
    assert out_bf.dtype == jnp.bfloat16
    assert jnp.allclose(out_bf.astype(jnp.float32), ref_bf.astype(jnp.float32),
                        rtol=2e-2, atol=1e-2), (out_bf, ref_bf)

    # 5) Small (7x7) feature map, more channels: lane-dense output with hw < 128.
    x2 = jax.random.uniform(jax.random.PRNGKey(1), (2, 24, 7, 7), dtype=jnp.float32)
    out2 = jax.block_until_ready(gem_forward(x2, p, eps))
    ref2 = gem_reference(x2, p, eps)
    assert jnp.allclose(out2, ref2, rtol=1e-4, atol=1e-5), (out2, ref2)

    # 6) Force the spatial-split / accumulator / masking / ragged-row paths by
    #    shrinking the per-buffer budget (exercises the huge-H*W code path).
    x3 = jax.random.uniform(jax.random.PRNGKey(2), (2, 5, 18, 18), dtype=jnp.float32)
    out3 = jax.block_until_ready(gem_forward(x3, p, eps, block_bytes=4096))
    ref3 = gem_reference(x3, p, eps)
    assert jnp.allclose(out3, ref3, rtol=1e-4, atol=1e-5), (out3, ref3)

    print("KERNEL_OK")
</pallas_src>

<mosaic_0001>
module attributes {stable_mosaic.version = 11 : i64} {
  func.func @_gem_kernel_int_p(%arg0: i32, %arg1: i32, %arg2: memref<8x256xf32, #tpu.memory_space<vmem>>, %arg3: memref<1x8xf32, #tpu.memory_space<vmem>>, %arg4: memref<1x8xf32, #tpu.memory_space<vmem>>) attributes {dimension_semantics = [#tpu.dimension_semantics<parallel>, #tpu.dimension_semantics<arbitrary>], iteration_bounds = array<i64: 1, 1>, scalar_prefetch = 0 : i64, scratch_operands = 1 : i64, tpu.core_type = #tpu.core_type<tc>, window_params = [{transform_indices = @transform_0, window_bounds = array<i64: 8, 256>}, {transform_indices = @transform_1, window_bounds = array<i64: 1, 8>}]} {
    %c0_i32 = arith.constant 0 : i32
    %0 = arith.cmpi eq, %arg1, %c0_i32 : i32
    %1 = arith.extui %0 : i1 to i32
    %c0_i32_0 = arith.constant 0 : i32
    %2 = arith.cmpi ne, %1, %c0_i32_0 : i32
    scf.if %2 {
      %cst_9 = arith.constant 0.000000e+00 : f32
      %16 = vector.broadcast %cst_9 : f32 to vector<1x8xf32>
      %c0_10 = arith.constant 0 : index
      %c0_11 = arith.constant 0 : index
      %17 = vector.load %arg4[%c0_10, %c0_11] : memref<1x8xf32, #tpu.memory_space<vmem>>, vector<1x8xf32>
      tpu.vector_store %arg4[%c0_10, %c0_11], %16 {strides = array<i32>} : memref<1x8xf32, #tpu.memory_space<vmem>>, vector<1x8xf32>,
    } else {
    }
    %c0 = arith.constant 0 : index
    %c0_1 = arith.constant 0 : index
    %3 = vector.load %arg2[%c0, %c0_1] : memref<8x256xf32, #tpu.memory_space<vmem>>, vector<8x256xf32>
    %cst = arith.constant 9.99999997E-7 : f32
    %4 = vector.broadcast %cst : f32 to vector<8x256xf32>
    %5 = arith.maximumf %3, %4 : vector<8x256xf32>
    %6 = arith.mulf %5, %5 : vector<8x256xf32>
    %7 = arith.mulf %5, %6 : vector<8x256xf32>
    %c0_2 = arith.constant 0 : index
    %c0_3 = arith.constant 0 : index
    %8 = vector.load %arg4[%c0_2, %c0_3] : memref<1x8xf32, #tpu.memory_space<vmem>>, vector<1x8xf32>
    %cst_4 = arith.constant dense<0.000000e+00> : vector<8xf32>
    %9 = vector.multi_reduction <add>, %7, %cst_4 [1] : vector<8x256xf32> to vector<8xf32>
    %10 = vector.shape_cast %9 : vector<8xf32> to vector<1x8xf32>
    %11 = arith.addf %8, %10 : vector<1x8xf32>
    %c0_5 = arith.constant 0 : index
    %c0_6 = arith.constant 0 : index
    %12 = vector.load %arg4[%c0_5, %c0_6] : memref<1x8xf32, #tpu.memory_space<vmem>>, vector<1x8xf32>
    tpu.vector_store %arg4[%c0_5, %c0_6], %11 {strides = array<i32>} : memref<1x8xf32, #tpu.memory_space<vmem>>, vector<1x8xf32>,
    %c0_i32_7 = arith.constant 0 : i32
    %13 = arith.cmpi eq, %arg1, %c0_i32_7 : i32
    %14 = arith.extui %13 : i1 to i32
    %c0_i32_8 = arith.constant 0 : i32
    %15 = arith.cmpi ne, %14, %c0_i32_8 : i32
    scf.if %15 {
      %c0_9 = arith.constant 0 : index
      %c0_10 = arith.constant 0 : index
      %16 = vector.load %arg4[%c0_9, %c0_10] : memref<1x8xf32, #tpu.memory_space<vmem>>, vector<1x8xf32>
      %cst_11 = arith.constant 3.906250e-03 : f32
      %17 = vector.broadcast %cst_11 : f32 to vector<1x8xf32>
      %18 = arith.mulf %16, %17 : vector<1x8xf32>
      %19 = math.log %18 : vector<1x8xf32>
      %cst_12 = arith.constant 0.333333343 : f32
      %20 = vector.broadcast %cst_12 : f32 to vector<1x8xf32>
      %21 = arith.mulf %19, %20 : vector<1x8xf32>
      %22 = math.exp %21 : vector<1x8xf32>
      %c0_13 = arith.constant 0 : index
      %c0_14 = arith.constant 0 : index
      %23 = vector.load %arg3[%c0_13, %c0_14] : memref<1x8xf32, #tpu.memory_space<vmem>>, vector<1x8xf32>
      tpu.vector_store %arg3[%c0_13, %c0_14], %22 {strides = array<i32>} : memref<1x8xf32, #tpu.memory_space<vmem>>, vector<1x8xf32>,
    } else {
    }
    return
  }
  func.func @transform_0(%arg0: i32, %arg1: i32) -> (i32, i32) {
    %c0_i32 = arith.constant 0 : i32
    return %arg0, %arg1 : i32, i32
  }
  func.func @transform_1(%arg0: i32, %arg1: i32) -> (i32, i32) {
    %c0_i32 = arith.constant 0 : i32
    %c0_i32_0 = arith.constant 0 : i32
    return %arg0, %c0_i32 : i32, i32
  }
}

</mosaic_0001>

<bundles_post_ra>
// kernel: tpu_custom_call.1
= control target key start
LH: loop header
LB: loop body
LE: loop exit
PB: predicated region body
PF: predicated region fallthrough
CT: control target
= control target key end

     0   :  { %6 = vsyncpa [#allocation4], 0  ;;  %s274_s0 = inlined_call_operand.hbm [shape: f32[8,256], index: 0, kind: input, shape index: {}]   ;;  %s275_s1 = inlined_call_operand.hbm [shape: f32[1,8], index: 1, kind: output, shape index: {}]  }
   0x1   :  { %7 = vsyncpa [#allocation5], 0  ;;  %s232_s6 = smov [#allocation3]   ;;  %s184_s10 = scalar_lea.hbm %s274_s0, 256 }
   0x2   :  { %s14_s7 = sshll.u32 %s232_s6, 4  ;;  %p185_p0 = scmp.ne.s32.totalorder %s274_s0, %s184_s10  ;;  %s15_s7 = int_to_ptr.vmem [resolvable:$true] %s14_s7 }
   0x3   :  { %p188_p1 = scmp.lt.u32.totalorder %s184_s10, %s274_s0 }
   0x5   :  { %p190_p2 = pnand %p188_p1, %p185_p0 }
   0x7   :  { %193 = shalt.err (!%p190_p2)
}
   0x8   :  { %s194_s15 = scalar_lea.vmem %s15_s7, 256  ;;  %p199_p4 = scmp.lt.s32.totalorder %s15_s7, %s15_s7 }
   0x9   :  { %p195_p3 = scmp.ne.s32.totalorder %s15_s7, %s194_s15  ;;  %p200_p5 = scmp.lt.s32.totalorder %s194_s15, %s194_s15 }
   0xb   :  { %p201_p6 = por %p200_p5, %p199_p4 }
   0xd   :  { %p202_p7 = pnand %p201_p6, %p195_p3 }
   0xf   :  { %205 = shalt.err (!%p202_p7)
}
  0x10   :  { %17 = dma.hbm_to_vmem [thread:$0]  %s274_s0, 256, %s15_s7, [#allocation4]  }
  0x11   :  { %228 = dma.done.wait [#allocation4], 256  }
  0x12   :  { %229 = vsyncadd [#allocation4], 4294967040  ;;  %v27_v0 = vld [vmem:[#allocation3] sm:$0xff]  ;;  %v28_v1 = vld [vmem:[#allocation3 + $0x8] sm:$0xff]  ;;  %v233_v9 = vmov 0   ;;  %v40_v10 = vlaneseq  ;;  %vm25_vm0 = vcmask 57344  }
  0x13   :  { %v29_v2 = vmax.f32 %v27_v0, 1e-06  ;;  %v30_v3 = vmax.f32 %v28_v1, 1e-06  ;;  %179 = vset.pattern.permute.xlu0 %v233_v9  ;;  %v234_v14 = vmov 1966171168  }
  0x14   :  { %v41_v11 = vshrl.u32 %v40_v10, 7  ;;  %v125_v12 = vand.u32 127, %v40_v10  ;;  %v77_v15 = vunpack.c.l.s4 %v234_v14  ;;  %v235_v48 = vmov 0.0   ;;  %s236_s0 = smov [#allocation6]  }
  0x15   :  { %v31_v4 = vmul.f32 %v29_v2, %v29_v2  ;;  %v32_v5 = vmul.f32 %v30_v3, %v30_v3  ;;  %26 = vst.msk [vmem:[#allocation2] sm:$0x1] %vm25_vm0, %v235_v48  ;;  %s165_s18 = sshll.u32 %s236_s0, 4  ;;  %s166_s18 = int_to_ptr.vmem [resolvable:$true] %s165_s18 }
  0x16   :  { %v128_v13 = vsub.s32 %v125_v12, %v41_v11  ;;  %v78_v16 = vunpack.c.0.s8 %v77_v15  ;;  %v42_v17 = vsub.s32 0, %v41_v11  ;;  %v46_v18 = vsub.s32 1, %v41_v11  ;;  %s206_s19 = scalar_lea.vmem %s166_s18, 16  ;;  %s210_s20 = scalar_lea.vmem %s166_s18, 32 }
  0x17   :  { %v33_v6 = vmul.f32 %v31_v4, %v29_v2  ;;  %v34_v7 = vmul.f32 %v32_v5, %v30_v3  ;;  %v50_v19 = vsub.s32 2, %v41_v11  ;;  %v54_v20 = vsub.s32 3, %v41_v11  ;;  %p207_p8 = scmp.ne.s32.totalorder %s166_s18, %s206_s19  ;;  %p211_p9 = scmp.lt.s32.totalorder %s166_s18, %s166_s18 }
  0x18   :  { %v58_v21 = vsub.s32 4, %v41_v11  ;;  %v62_v22 = vsub.s32 5, %v41_v11  ;;  %v66_v23 = vsub.s32 6, %v41_v11  ;;  %v70_v24 = vsub.s32 7, %v41_v11  ;;  %p212_p10 = scmp.lt.s32.totalorder %s210_s20, %s206_s19 }
  0x19   :  { %v36_v8 = vadd.f32 %v34_v7, %v33_v6  ;;  %v81_v26 = vsub.s32 %v78_v16, %v41_v11 }
  0x1a   :  { %p213_p11 = por %p212_p10, %p211_p9 }
  0x1b   :  { %37 = vadd.xlane.f32.xlu0 %v36_v8 }
  0x1c   :  { %v35_v52 = vld [vmem:[#allocation2] sm:$0x1]  ;;  %p214_p12 = pnand %p213_p11, %p207_p8 }
  0xa8   :  { %v38_v25 = vpop.xlane.xlu0 %37 }
  0xa9   :  { %v43_v27 = vrot.slane %v38_v25, %v42_v17  ;;  %v47_v28 = vrot.slane %v38_v25, %v46_v18  ;;  %v51_v29 = vrot.slane %v38_v25, %v50_v19  ;;  %v55_v30 = vrot.slane %v38_v25, %v54_v20 }
  0xaa   :  { %v59_v31 = vrot.slane %v38_v25, %v58_v21  ;;  %v63_v32 = vrot.slane %v38_v25, %v62_v22  ;;  %v67_v33 = vrot.slane %v38_v25, %v66_v23  ;;  %v71_v34 = vrot.slane %v38_v25, %v70_v24 }
  0xab   :  { %v72_v35 = vcombine.low %v43_v27, %v47_v28  ;;  %v73_v36 = vcombine.low %v51_v29, %v55_v30 }
  0xac   :  { %v74_v37 = vcombine.low %v59_v31, %v63_v32  ;;  %v75_v38 = vcombine.low %v67_v33, %v71_v34 }
  0xad   :  { %v82_v39 = vrot.slane %v72_v35, %v81_v26  ;;  %v89_v40 = vrot.slane %v73_v36, %v81_v26 }
  0xae   :  { %v96_v41 = vrot.slane %v74_v37, %v81_v26  ;;  %v103_v42 = vrot.slane %v75_v38, %v81_v26 }
  0xaf   :  { %v104_v43 = vcombine.low %v82_v39, %v89_v40 }
  0xb0   :  { %v105_v44 = vcombine.low %v96_v41, %v103_v42 }
  0xb1   :  { %v112_v45 = vrot.slane %v104_v43, %v81_v26 }
  0xb2   :  { %v119_v46 = vrot.slane %v105_v44, %v81_v26 }
  0xb4   :  { %v120_v47 = vcombine.low %v112_v45, %v119_v46 }
  0xb6   :  { %122 = vperm.xlu0 %179, %v120_v47  }
 0x135   :  { %v123_v49 = vpop.permute.xlu0 %122 }
 0x136   :  { %v129_v50 = vrot.slane %v123_v49, %v128_v13 }
 0x138   :  { %v136_v51 = vrot.slane %v129_v50, %v81_v26 }
 0x13a   :  { %v143_v53 = vrot.slane %v136_v51, %v81_v26 }
 0x13c   :  { %v145_v54 = vadd.f32 %v143_v53, %v35_v52 }
 0x13e   :  { %147 = vst.msk [vmem:[#allocation2] sm:$0x1] %vm25_vm0, %v145_v54 }
 0x145   :  { %v151_v55 = vld [vmem:[#allocation2] sm:$0x1] }
 0x146   :  { %v152_v56 = vmul.f32 0.00390625, %v151_v55 }
 0x148   :  { %180 = vlog2.f32 %v152_v56 }
 0x152   :  { %v181_v57 = vpop.eup %180 }
 0x153   :  { %v154_v58 = vmul.f32 0.6931472, %v181_v57 }
 0x155   :  { %v155_v59 = vmul.f32 0.33333334, %v154_v58 }
 0x157   :  { %v156_v60 = vmul.f32 1.442695, %v155_v59 }
 0x159   :  { %182 = vpow2.f32 %v156_v60 }
 0x163   :  { %v183_v61 = vpop.eup %182 }
 0x164   :  { %158 = vst.msk [vmem:[#allocation6] sm:$0x1] %vm25_vm0, %v183_v61 }
 0x165   :  { %217 = shalt.err (!%p214_p12)
}
 0x166   :  { %s218_s23 = scalar_lea.hbm %s275_s1, 16 }
 0x167   :  { %p219_p13 = scmp.ne.s32.totalorder %s275_s1, %s218_s23  ;;  %p222_p0 = scmp.lt.u32.totalorder %s218_s23, %s275_s1 }
 0x169   :  { %p224_p1 = pnand %p222_p0, %p219_p13 }
 0x16b   :  { %227 = shalt.err (!%p224_p1)
}
 0x16c   :  { %168 = dma.vmem_to_hbm [thread:$0]  %s166_s18, 16, %s275_s1, [#allocation5]  }
 0x16d   :  { %230 = dma.done.wait [#allocation5], 16  }
 0x16e   :  { %231 = vsyncadd [#allocation5], 4294967280 }
 0x16f   :  { %172 = vsyncpa [#allocation4], 1 }
 0x170   :  { %173 = vsyncpa [#allocation5], 1 }

</bundles_post_ra>
